<compile_context>
chip_gen: v7x
topology: tpu7x:2x2x1
jax: 0.10.0
libtpu: 0.0.40
codegen_flags: <defaults>
</compile_context>

<pallas_src>
import jax
import jax.numpy as jnp
from jax import lax
from jax.experimental import pallas as pl
from jax.experimental.pallas import tpu as pltpu

HIDDEN = 32
HEADS = 4
FF = 64
SEQ = 8
BATCH = 2
HEAD_DIM = HIDDEN // HEADS
EPS = 1e-5

W_ROWS = 3 * HIDDEN + FF   # packed weight slab rows: wqkv(32) + wo(32) + w1(32) + w2(64)


def _layernorm(x, g, b):
    mu = jnp.mean(x, axis=-1, keepdims=True)
    var = jnp.mean((x - mu) ** 2, axis=-1, keepdims=True)
    return (x - mu) * lax.rsqrt(var + EPS) * g + b


# ---------------- single fused kernel (no grid, everything resident in VMEM) ----------
def encoder_layer_kernel(x_ref, w_ref, v_ref, o_ref):
    S, B, H = x_ref.shape
    nh, hd = HEADS, HEAD_DIM

    # ---- unpack parameters from the two packed slabs (static ref slices, done once) --
    wqkv = w_ref[pl.ds(0, H), pl.ds(0, 3 * H)]            # (32, 96)  x @ wqkv -> [q|k|v]
    wo   = w_ref[pl.ds(H, H), pl.ds(0, H)]                # (32, 32)
    w1   = w_ref[pl.ds(2 * H, H), pl.ds(0, FF)]           # (32, 64)
    w2   = w_ref[pl.ds(3 * H, FF), pl.ds(0, H)]           # (64, 32)

    g1   = v_ref[pl.ds(0, 1), pl.ds(0, H)]                # (1, 32)
    b1   = v_ref[pl.ds(1, 1), pl.ds(0, H)]
    bqkv = v_ref[pl.ds(2, 1), pl.ds(0, 3 * H)]            # (1, 96)  (Q part pre-scaled)
    bo   = v_ref[pl.ds(3, 1), pl.ds(0, H)]
    g2   = v_ref[pl.ds(4, 1), pl.ds(0, H)]
    b2   = v_ref[pl.ds(5, 1), pl.ds(0, H)]
    bf1  = v_ref[pl.ds(6, 1), pl.ds(0, FF)]               # (1, 64)
    bf2  = v_ref[pl.ds(7, 1), pl.ds(0, H)]

    # ---- gather the (B*S, H) activation slab, rows ordered (batch, seq) --------------
    x = jnp.concatenate([x_ref[:, b, :] for b in range(B)], axis=0)   # (16, 32)

    # ---- LayerNorm1 + fused QKV projection on the whole slab --------------------------
    xn = _layernorm(x, g1, b1)
    qkv = jnp.dot(xn, wqkv, preferred_element_type=jnp.float32) + bqkv   # (16, 96)

    # ---- attention: per-(batch, head) 8x8 score / softmax / PV ------------------------
    ctx_rows = []
    for b in range(B):                          # static unroll, B and nh are tiny
        r0 = b * S
        head_ctx = []
        for h in range(nh):
            c0 = h * hd
            qh = qkv[r0:r0 + S, c0:c0 + hd]                          # (8, 8), pre-scaled
            kh = qkv[r0:r0 + S, H + c0:H + c0 + hd]
            vh = qkv[r0:r0 + S, 2 * H + c0:2 * H + c0 + hd]
            # q @ k^T via contraction on the last axes (no explicit transpose)
            s = lax.dot_general(qh, kh, (((1,), (1,)), ((), ())),
                                preferred_element_type=jnp.float32)  # (8, 8)
            s = s - jnp.max(s, axis=-1, keepdims=True)
            p = jnp.exp(s)
            inv_l = pl.reciprocal(jnp.sum(p, axis=-1, keepdims=True), approx=False)
            head_ctx.append(jnp.dot(p * inv_l, vh,
                                    preferred_element_type=jnp.float32))   # (8, 8)
        ctx_rows.append(jnp.concatenate(head_ctx, axis=-1))                # (8, 32)
    ctx = jnp.concatenate(ctx_rows, axis=0)                                # (16, 32)

    # ---- output projection (single lane-dense matmul) + residual ----------------------
    xr = x + jnp.dot(ctx, wo, preferred_element_type=jnp.float32) + bo

    # ---- LayerNorm2 + FFN + residual (dropout == identity) ----------------------------
    xn2 = _layernorm(xr, g2, b2)
    hmid = jnp.maximum(jnp.dot(xn2, w1, preferred_element_type=jnp.float32) + bf1, 0.0)
    y = xr + jnp.dot(hmid, w2, preferred_element_type=jnp.float32) + bf2    # (16, 32)

    # ---- scatter back to the native (S, B, H) layout ----------------------------------
    for b in range(B):
        o_ref[:, b, :] = y[b * S:(b + 1) * S, :]


def transformer_encoder_layer(z, kp):
    """z: (S, B, H) sequence-first (PyTorch MultiheadAttention default layout).
    No wrapper transposes: the kernel consumes/produces the native layout directly."""
    S, B, H = z.shape
    vmem = pl.BlockSpec(memory_space=pltpu.MemorySpace.VMEM)
    return pl.pallas_call(
        encoder_layer_kernel,
        out_shape=jax.ShapeDtypeStruct((S, B, H), jnp.float32),
        in_specs=[vmem, vmem, vmem],
        out_specs=vmem,
    )(z, kp["wslab"], kp["vslab"])


def init_params(key):
    ks = jax.random.split(key, 8)
    s = 0.02
    return {
        # PyTorch shapes: weights are (out_features, in_features)
        "w_qkv": jax.random.normal(ks[0], (3 * HIDDEN, HIDDEN), jnp.float32) * s,
        "b_qkv": jax.random.normal(ks[1], (3 * HIDDEN,), jnp.float32) * s,
        "w_o":   jax.random.normal(ks[2], (HIDDEN, HIDDEN), jnp.float32) * s,
        "b_o":   jax.random.normal(ks[3], (HIDDEN,), jnp.float32) * s,
        "w1":    jax.random.normal(ks[4], (FF, HIDDEN), jnp.float32) * s,
        "bf1":   jax.random.normal(ks[5], (FF,), jnp.float32) * s,
        "w2":    jax.random.normal(ks[6], (HIDDEN, FF), jnp.float32) * s,
        "bf2":   jax.random.normal(ks[7], (HIDDEN,), jnp.float32) * s,
        "g1": jnp.ones((HIDDEN,), jnp.float32),
        "b1": jnp.zeros((HIDDEN,), jnp.float32),
        "g2": jnp.ones((HIDDEN,), jnp.float32),
        "b2": jnp.zeros((HIDDEN,), jnp.float32),
    }


def prepare_kernel_params(p):
    """One-time layout prep: transpose weights, fold the softmax scale into Q, and pack
    all 16 parameter tensors into two lane-dense (rows, 128) slabs."""
    H, FFD, hd = HIDDEN, FF, HEAD_DIM
    scale = 1.0 / (float(hd) ** 0.5)

    wqkv_t = p["w_qkv"].T                        # (H, 3H): columns = [Q | K | V]
    wqkv_t = wqkv_t.at[:, :H].multiply(scale)    # fold 1/sqrt(hd) into Q weights
    bqkv = p["b_qkv"].at[:H].multiply(scale)     # ... and Q bias

    wslab = jnp.zeros((W_ROWS, 128), jnp.float32)
    wslab = wslab.at[0:H, 0:3 * H].set(wqkv_t)                 # rows [0,32)
    wslab = wslab.at[H:2 * H, 0:H].set(p["w_o"].T)             # rows [32,64)
    wslab = wslab.at[2 * H:3 * H, 0:FFD].set(p["w1"].T)        # rows [64,96)
    wslab = wslab.at[3 * H:3 * H + FFD, 0:H].set(p["w2"].T)    # rows [96,160)

    vrows = [
        (p["g1"], H), (p["b1"], H), (bqkv, 3 * H), (p["b_o"], H),
        (p["g2"], H), (p["b2"], H), (p["bf1"], FFD), (p["bf2"], H),
    ]
    vslab = jnp.zeros((8, 128), jnp.float32)
    for i, (vec, width) in enumerate(vrows):
        vslab = vslab.at[i, 0:width].set(vec)

    return {"wslab": wslab, "vslab": vslab}


def reference(z, p):
    """Plain-JAX reference mirroring the PyTorch module's forward (eval mode)."""
    S, B, H = z.shape
    nh, hd = HEADS, HEAD_DIM

    def ln(x, g, b):
        mu = x.mean(-1, keepdims=True)
        var = ((x - mu) ** 2).mean(-1, keepdims=True)
        return (x - mu) / jnp.sqrt(var + EPS) * g + b

    xn = ln(z, p["g1"], p["b1"])
    qkv = xn @ p["w_qkv"].T + p["b_qkv"]
    q, k, v = jnp.split(qkv, 3, axis=-1)

    def heads(t):
        return t.reshape(S, B, nh, hd).transpose(1, 2, 0, 3)

    qh, kh, vh = heads(q), heads(k), heads(v)
    s = jnp.einsum("bnsd,bntd->bnst", qh, kh) / jnp.sqrt(jnp.float32(hd))
    a = jax.nn.softmax(s, axis=-1)
    ctx = jnp.einsum("bnst,bntd->bnsd", a, vh).transpose(2, 0, 1, 3).reshape(S, B, H)
    attn_out = ctx @ p["w_o"].T + p["b_o"]
    x = z + attn_out
    xn2 = ln(x, p["g2"], p["b2"])
    ff = jnp.maximum(xn2 @ p["w1"].T + p["bf1"], 0.0) @ p["w2"].T + p["bf2"]
    return x + ff


if __name__ == "__main__":
    key = jax.random.PRNGKey(0)
    pkey, zkey = jax.random.split(key)
    params = init_params(pkey)
    kparams = prepare_kernel_params(params)      # layout prep done once, outside forward
    z = jax.random.normal(zkey, (SEQ, BATCH, HIDDEN), jnp.float32)

    fwd = jax.jit(transformer_encoder_layer)
    out = jax.block_until_ready(fwd(z, kparams))

    ref = reference(z, params)
    assert out.shape == z.shape
    assert bool(jnp.allclose(out, ref, rtol=1e-4, atol=1e-4)), "mismatch vs reference"
    print("KERNEL_OK")
</pallas_src>

<mosaic_0001>
module attributes {stable_mosaic.version = 11 : i64} {
  func.func @encoder_layer_kernel(%arg0: memref<8x2x32xf32, #tpu.memory_space<vmem>>, %arg1: memref<160x128xf32, #tpu.memory_space<vmem>>, %arg2: memref<8x128xf32, #tpu.memory_space<vmem>>, %arg3: memref<8x2x32xf32, #tpu.memory_space<vmem>>) attributes {dimension_semantics = [], scalar_prefetch = 0 : i64, scratch_operands = 0 : i64, tpu.core_type = #tpu.core_type<tc>} {
    %c0 = arith.constant 0 : index
    %c0_0 = arith.constant 0 : index
    %0 = vector.load %arg1[%c0, %c0_0] : memref<160x128xf32, #tpu.memory_space<vmem>>, vector<32x96xf32>
    %c32 = arith.constant 32 : index
    %c0_1 = arith.constant 0 : index
    %1 = vector.load %arg1[%c32, %c0_1] : memref<160x128xf32, #tpu.memory_space<vmem>>, vector<32x32xf32>
    %c64 = arith.constant 64 : index
    %c0_2 = arith.constant 0 : index
    %2 = vector.load %arg1[%c64, %c0_2] : memref<160x128xf32, #tpu.memory_space<vmem>>, vector<32x64xf32>
    %c96 = arith.constant 96 : index
    %c0_3 = arith.constant 0 : index
    %3 = vector.load %arg1[%c96, %c0_3] : memref<160x128xf32, #tpu.memory_space<vmem>>, vector<64x32xf32>
    %c0_4 = arith.constant 0 : index
    %c0_5 = arith.constant 0 : index
    %4 = vector.load %arg2[%c0_4, %c0_5] : memref<8x128xf32, #tpu.memory_space<vmem>>, vector<1x32xf32>
    %c1 = arith.constant 1 : index
    %c0_6 = arith.constant 0 : index
    %5 = vector.load %arg2[%c1, %c0_6] : memref<8x128xf32, #tpu.memory_space<vmem>>, vector<1x32xf32>
    %c2 = arith.constant 2 : index
    %c0_7 = arith.constant 0 : index
    %6 = vector.load %arg2[%c2, %c0_7] : memref<8x128xf32, #tpu.memory_space<vmem>>, vector<1x96xf32>
    %c3 = arith.constant 3 : index
    %c0_8 = arith.constant 0 : index
    %7 = vector.load %arg2[%c3, %c0_8] : memref<8x128xf32, #tpu.memory_space<vmem>>, vector<1x32xf32>
    %c4 = arith.constant 4 : index
    %c0_9 = arith.constant 0 : index
    %8 = vector.load %arg2[%c4, %c0_9] : memref<8x128xf32, #tpu.memory_space<vmem>>, vector<1x32xf32>
    %c5 = arith.constant 5 : index
    %c0_10 = arith.constant 0 : index
    %9 = vector.load %arg2[%c5, %c0_10] : memref<8x128xf32, #tpu.memory_space<vmem>>, vector<1x32xf32>
    %c6 = arith.constant 6 : index
    %c0_11 = arith.constant 0 : index
    %10 = vector.load %arg2[%c6, %c0_11] : memref<8x128xf32, #tpu.memory_space<vmem>>, vector<1x64xf32>
    %c7 = arith.constant 7 : index
    %c0_12 = arith.constant 0 : index
    %11 = vector.load %arg2[%c7, %c0_12] : memref<8x128xf32, #tpu.memory_space<vmem>>, vector<1x32xf32>
    %c0_13 = arith.constant 0 : index
    %c0_14 = arith.constant 0 : index
    %c0_15 = arith.constant 0 : index
    %12 = vector.load %arg0[%c0_13, %c0_14, %c0_15] : memref<8x2x32xf32, #tpu.memory_space<vmem>>, vector<8x1x32xf32>
    %13 = vector.shape_cast %12 : vector<8x1x32xf32> to vector<8x32xf32>
    %c0_16 = arith.constant 0 : index
    %c1_17 = arith.constant 1 : index
    %c0_18 = arith.constant 0 : index
    %14 = vector.load %arg0[%c0_16, %c1_17, %c0_18] : memref<8x2x32xf32, #tpu.memory_space<vmem>>, vector<8x1x32xf32>
    %15 = vector.shape_cast %14 : vector<8x1x32xf32> to vector<8x32xf32>
    %16 = tpu.concatenate %13, %15 in 0 : vector<8x32xf32>, vector<8x32xf32> -> vector<16x32xf32>
    %cst = arith.constant dense<0.000000e+00> : vector<16xf32>
    %17 = vector.multi_reduction <add>, %16, %cst [1] : vector<16x32xf32> to vector<16xf32>
    %18 = vector.shape_cast %17 : vector<16xf32> to vector<16x1xf32>
    %cst_19 = arith.constant 3.200000e+01 : f32
    %19 = vector.broadcast %cst_19 : f32 to vector<16x1xf32>
    %20 = arith.divf %18, %19 : vector<16x1xf32>
    %21 = vector.broadcast %20 : vector<16x1xf32> to vector<16x32xf32>
    %22 = arith.subf %16, %21 : vector<16x32xf32>
    %23 = arith.mulf %22, %22 : vector<16x32xf32>
    %cst_20 = arith.constant dense<0.000000e+00> : vector<16xf32>
    %24 = vector.multi_reduction <add>, %23, %cst_20 [1] : vector<16x32xf32> to vector<16xf32>
    %25 = vector.shape_cast %24 : vector<16xf32> to vector<16x1xf32>
    %cst_21 = arith.constant 3.200000e+01 : f32
    %26 = vector.broadcast %cst_21 : f32 to vector<16x1xf32>
    %27 = arith.divf %25, %26 : vector<16x1xf32>
    %28 = vector.broadcast %20 : vector<16x1xf32> to vector<16x32xf32>
    %29 = arith.subf %16, %28 : vector<16x32xf32>
    %cst_22 = arith.constant 9.99999974E-6 : f32
    %30 = vector.broadcast %cst_22 : f32 to vector<16x1xf32>
    %31 = arith.addf %27, %30 : vector<16x1xf32>
    %32 = math.rsqrt %31 : vector<16x1xf32>
    %33 = vector.broadcast %32 : vector<16x1xf32> to vector<16x32xf32>
    %34 = arith.mulf %29, %33 : vector<16x32xf32>
    %35 = vector.broadcast %4 : vector<1x32xf32> to vector<16x32xf32>
    %36 = arith.mulf %34, %35 : vector<16x32xf32>
    %37 = vector.broadcast %5 : vector<1x32xf32> to vector<16x32xf32>
    %38 = arith.addf %36, %37 : vector<16x32xf32>
    %cst_23 = arith.constant dense<0.000000e+00> : vector<16x96xf32>
    %39 = tpu.matmul %38, %0, %cst_23 {dimension_numbers = #tpu.dot_dimension_numbers<[1], [0], [0], [1], [0, 0, 1, 1], [], []>} : vector<16x32xf32>, vector<32x96xf32>, vector<16x96xf32> -> vector<16x96xf32>
    %40 = vector.broadcast %6 : vector<1x96xf32> to vector<16x96xf32>
    %41 = arith.addf %39, %40 : vector<16x96xf32>
    %42 = vector.extract_strided_slice %41 {offsets = [0, 0], sizes = [8, 8], strides = [1, 1]} : vector<16x96xf32> to vector<8x8xf32>
    %43 = vector.extract_strided_slice %41 {offsets = [0, 32], sizes = [8, 8], strides = [1, 1]} : vector<16x96xf32> to vector<8x8xf32>
    %44 = vector.extract_strided_slice %41 {offsets = [0, 64], sizes = [8, 8], strides = [1, 1]} : vector<16x96xf32> to vector<8x8xf32>
    %cst_24 = arith.constant dense<0.000000e+00> : vector<8x8xf32>
    %45 = tpu.matmul %42, %43, %cst_24 {dimension_numbers = #tpu.dot_dimension_numbers<[1], [1], [0], [0], [0, 0, 1, 0], [], []>} : vector<8x8xf32>, vector<8x8xf32>, vector<8x8xf32> -> vector<8x8xf32>
    %cst_25 = arith.constant dense<0xFF800000> : vector<8xf32>
    %46 = vector.multi_reduction <maximumf>, %45, %cst_25 [1] : vector<8x8xf32> to vector<8xf32>
    %47 = vector.shape_cast %46 : vector<8xf32> to vector<8x1xf32>
    %48 = vector.broadcast %47 : vector<8x1xf32> to vector<8x8xf32>
    %49 = arith.subf %45, %48 : vector<8x8xf32>
    %50 = math.exp %49 : vector<8x8xf32>
    %cst_26 = arith.constant dense<0.000000e+00> : vector<8xf32>
    %51 = vector.multi_reduction <add>, %50, %cst_26 [1] : vector<8x8xf32> to vector<8xf32>
    %52 = vector.shape_cast %51 : vector<8xf32> to vector<8x1xf32>
    %53 = tpu.reciprocal %52 : vector<8x1xf32> -> vector<8x1xf32>
    %54 = vector.broadcast %53 : vector<8x1xf32> to vector<8x8xf32>
    %55 = arith.mulf %50, %54 : vector<8x8xf32>
    %cst_27 = arith.constant dense<0.000000e+00> : vector<8x8xf32>
    %56 = tpu.matmul %55, %44, %cst_27 {dimension_numbers = #tpu.dot_dimension_numbers<[1], [0], [0], [1], [0, 0, 1, 1], [], []>} : vector<8x8xf32>, vector<8x8xf32>, vector<8x8xf32> -> vector<8x8xf32>
    %57 = vector.extract_strided_slice %41 {offsets = [0, 8], sizes = [8, 8], strides = [1, 1]} : vector<16x96xf32> to vector<8x8xf32>
    %58 = vector.extract_strided_slice %41 {offsets = [0, 40], sizes = [8, 8], strides = [1, 1]} : vector<16x96xf32> to vector<8x8xf32>
    %59 = vector.extract_strided_slice %41 {offsets = [0, 72], sizes = [8, 8], strides = [1, 1]} : vector<16x96xf32> to vector<8x8xf32>
    %cst_28 = arith.constant dense<0.000000e+00> : vector<8x8xf32>
    %60 = tpu.matmul %57, %58, %cst_28 {dimension_numbers = #tpu.dot_dimension_numbers<[1], [1], [0], [0], [0, 0, 1, 0], [], []>} : vector<8x8xf32>, vector<8x8xf32>, vector<8x8xf32> -> vector<8x8xf32>
    %cst_29 = arith.constant dense<0xFF800000> : vector<8xf32>
    %61 = vector.multi_reduction <maximumf>, %60, %cst_29 [1] : vector<8x8xf32> to vector<8xf32>
    %62 = vector.shape_cast %61 : vector<8xf32> to vector<8x1xf32>
    %63 = vector.broadcast %62 : vector<8x1xf32> to vector<8x8xf32>
    %64 = arith.subf %60, %63 : vector<8x8xf32>
    %65 = math.exp %64 : vector<8x8xf32>
    %cst_30 = arith.constant dense<0.000000e+00> : vector<8xf32>
    %66 = vector.multi_reduction <add>, %65, %cst_30 [1] : vector<8x8xf32> to vector<8xf32>
    %67 = vector.shape_cast %66 : vector<8xf32> to vector<8x1xf32>
    %68 = tpu.reciprocal %67 : vector<8x1xf32> -> vector<8x1xf32>
    %69 = vector.broadcast %68 : vector<8x1xf32> to vector<8x8xf32>
    %70 = arith.mulf %65, %69 : vector<8x8xf32>
    %cst_31 = arith.constant dense<0.000000e+00> : vector<8x8xf32>
    %71 = tpu.matmul %70, %59, %cst_31 {dimension_numbers = #tpu.dot_dimension_numbers<[1], [0], [0], [1], [0, 0, 1, 1], [], []>} : vector<8x8xf32>, vector<8x8xf32>, vector<8x8xf32> -> vector<8x8xf32>
    %72 = vector.extract_strided_slice %41 {offsets = [0, 16], sizes = [8, 8], strides = [1, 1]} : vector<16x96xf32> to vector<8x8xf32>
    %73 = vector.extract_strided_slice %41 {offsets = [0, 48], sizes = [8, 8], strides = [1, 1]} : vector<16x96xf32> to vector<8x8xf32>
    %74 = vector.extract_strided_slice %41 {offsets = [0, 80], sizes = [8, 8], strides = [1, 1]} : vector<16x96xf32> to vector<8x8xf32>
    %cst_32 = arith.constant dense<0.000000e+00> : vector<8x8xf32>
    %75 = tpu.matmul %72, %73, %cst_32 {dimension_numbers = #tpu.dot_dimension_numbers<[1], [1], [0], [0], [0, 0, 1, 0], [], []>} : vector<8x8xf32>, vector<8x8xf32>, vector<8x8xf32> -> vector<8x8xf32>
    %cst_33 = arith.constant dense<0xFF800000> : vector<8xf32>
    %76 = vector.multi_reduction <maximumf>, %75, %cst_33 [1] : vector<8x8xf32> to vector<8xf32>
    %77 = vector.shape_cast %76 : vector<8xf32> to vector<8x1xf32>
    %78 = vector.broadcast %77 : vector<8x1xf32> to vector<8x8xf32>
    %79 = arith.subf %75, %78 : vector<8x8xf32>
    %80 = math.exp %79 : vector<8x8xf32>
    %cst_34 = arith.constant dense<0.000000e+00> : vector<8xf32>
    %81 = vector.multi_reduction <add>, %80, %cst_34 [1] : vector<8x8xf32> to vector<8xf32>
    %82 = vector.shape_cast %81 : vector<8xf32> to vector<8x1xf32>
    %83 = tpu.reciprocal %82 : vector<8x1xf32> -> vector<8x1xf32>
    %84 = vector.broadcast %83 : vector<8x1xf32> to vector<8x8xf32>
    %85 = arith.mulf %80, %84 : vector<8x8xf32>
    %cst_35 = arith.constant dense<0.000000e+00> : vector<8x8xf32>
    %86 = tpu.matmul %85, %74, %cst_35 {dimension_numbers = #tpu.dot_dimension_numbers<[1], [0], [0], [1], [0, 0, 1, 1], [], []>} : vector<8x8xf32>, vector<8x8xf32>, vector<8x8xf32> -> vector<8x8xf32>
    %87 = vector.extract_strided_slice %41 {offsets = [0, 24], sizes = [8, 8], strides = [1, 1]} : vector<16x96xf32> to vector<8x8xf32>
    %88 = vector.extract_strided_slice %41 {offsets = [0, 56], sizes = [8, 8], strides = [1, 1]} : vector<16x96xf32> to vector<8x8xf32>
    %89 = vector.extract_strided_slice %41 {offsets = [0, 88], sizes = [8, 8], strides = [1, 1]} : vector<16x96xf32> to vector<8x8xf32>
    %cst_36 = arith.constant dense<0.000000e+00> : vector<8x8xf32>
    %90 = tpu.matmul %87, %88, %cst_36 {dimension_numbers = #tpu.dot_dimension_numbers<[1], [1], [0], [0], [0, 0, 1, 0], [], []>} : vector<8x8xf32>, vector<8x8xf32>, vector<8x8xf32> -> vector<8x8xf32>
    %cst_37 = arith.constant dense<0xFF800000> : vector<8xf32>
    %91 = vector.multi_reduction <maximumf>, %90, %cst_37 [1] : vector<8x8xf32> to vector<8xf32>
    %92 = vector.shape_cast %91 : vector<8xf32> to vector<8x1xf32>
    %93 = vector.broadcast %92 : vector<8x1xf32> to vector<8x8xf32>
    %94 = arith.subf %90, %93 : vector<8x8xf32>
    %95 = math.exp %94 : vector<8x8xf32>
    %cst_38 = arith.constant dense<0.000000e+00> : vector<8xf32>
    %96 = vector.multi_reduction <add>, %95, %cst_38 [1] : vector<8x8xf32> to vector<8xf32>
    %97 = vector.shape_cast %96 : vector<8xf32> to vector<8x1xf32>
    %98 = tpu.reciprocal %97 : vector<8x1xf32> -> vector<8x1xf32>
    %99 = vector.broadcast %98 : vector<8x1xf32> to vector<8x8xf32>
    %100 = arith.mulf %95, %99 : vector<8x8xf32>
    %cst_39 = arith.constant dense<0.000000e+00> : vector<8x8xf32>
    %101 = tpu.matmul %100, %89, %cst_39 {dimension_numbers = #tpu.dot_dimension_numbers<[1], [0], [0], [1], [0, 0, 1, 1], [], []>} : vector<8x8xf32>, vector<8x8xf32>, vector<8x8xf32> -> vector<8x8xf32>
    %102 = tpu.concatenate %56, %71, %86, %101 in 1 : vector<8x8xf32>, vector<8x8xf32>, vector<8x8xf32>, vector<8x8xf32> -> vector<8x32xf32>
    %103 = vector.extract_strided_slice %41 {offsets = [8, 0], sizes = [8, 8], strides = [1, 1]} : vector<16x96xf32> to vector<8x8xf32>
    %104 = vector.extract_strided_slice %41 {offsets = [8, 32], sizes = [8, 8], strides = [1, 1]} : vector<16x96xf32> to vector<8x8xf32>
    %105 = vector.extract_strided_slice %41 {offsets = [8, 64], sizes = [8, 8], strides = [1, 1]} : vector<16x96xf32> to vector<8x8xf32>
    %cst_40 = arith.constant dense<0.000000e+00> : vector<8x8xf32>
    %106 = tpu.matmul %103, %104, %cst_40 {dimension_numbers = #tpu.dot_dimension_numbers<[1], [1], [0], [0], [0, 0, 1, 0], [], []>} : vector<8x8xf32>, vector<8x8xf32>, vector<8x8xf32> -> vector<8x8xf32>
    %cst_41 = arith.constant dense<0xFF800000> : vector<8xf32>
    %107 = vector.multi_reduction <maximumf>, %106, %cst_41 [1] : vector<8x8xf32> to vector<8xf32>
    %108 = vector.shape_cast %107 : vector<8xf32> to vector<8x1xf32>
    %109 = vector.broadcast %108 : vector<8x1xf32> to vector<8x8xf32>
    %110 = arith.subf %106, %109 : vector<8x8xf32>
    %111 = math.exp %110 : vector<8x8xf32>
    %cst_42 = arith.constant dense<0.000000e+00> : vector<8xf32>
    %112 = vector.multi_reduction <add>, %111, %cst_42 [1] : vector<8x8xf32> to vector<8xf32>
    %113 = vector.shape_cast %112 : vector<8xf32> to vector<8x1xf32>
    %114 = tpu.reciprocal %113 : vector<8x1xf32> -> vector<8x1xf32>
    %115 = vector.broadcast %114 : vector<8x1xf32> to vector<8x8xf32>
    %116 = arith.mulf %111, %115 : vector<8x8xf32>
    %cst_43 = arith.constant dense<0.000000e+00> : vector<8x8xf32>
    %117 = tpu.matmul %116, %105, %cst_43 {dimension_numbers = #tpu.dot_dimension_numbers<[1], [0], [0], [1], [0, 0, 1, 1], [], []>} : vector<8x8xf32>, vector<8x8xf32>, vector<8x8xf32> -> vector<8x8xf32>
    %118 = vector.extract_strided_slice %41 {offsets = [8, 8], sizes = [8, 8], strides = [1, 1]} : vector<16x96xf32> to vector<8x8xf32>
    %119 = vector.extract_strided_slice %41 {offsets = [8, 40], sizes = [8, 8], strides = [1, 1]} : vector<16x96xf32> to vector<8x8xf32>
    %120 = vector.extract_strided_slice %41 {offsets = [8, 72], sizes = [8, 8], strides = [1, 1]} : vector<16x96xf32> to vector<8x8xf32>
    %cst_44 = arith.constant dense<0.000000e+00> : vector<8x8xf32>
    %121 = tpu.matmul %118, %119, %cst_44 {dimension_numbers = #tpu.dot_dimension_numbers<[1], [1], [0], [0], [0, 0, 1, 0], [], []>} : vector<8x8xf32>, vector<8x8xf32>, vector<8x8xf32> -> vector<8x8xf32>
    %cst_45 = arith.constant dense<0xFF800000> : vector<8xf32>
    %122 = vector.multi_reduction <maximumf>, %121, %cst_45 [1] : vector<8x8xf32> to vector<8xf32>
    %123 = vector.shape_cast %122 : vector<8xf32> to vector<8x1xf32>
    %124 = vector.broadcast %123 : vector<8x1xf32> to vector<8x8xf32>
    %125 = arith.subf %121, %124 : vector<8x8xf32>
    %126 = math.exp %125 : vector<8x8xf32>
    %cst_46 = arith.constant dense<0.000000e+00> : vector<8xf32>
    %127 = vector.multi_reduction <add>, %126, %cst_46 [1] : vector<8x8xf32> to vector<8xf32>
    %128 = vector.shape_cast %127 : vector<8xf32> to vector<8x1xf32>
    %129 = tpu.reciprocal %128 : vector<8x1xf32> -> vector<8x1xf32>
    %130 = vector.broadcast %129 : vector<8x1xf32> to vector<8x8xf32>
    %131 = arith.mulf %126, %130 : vector<8x8xf32>
    %cst_47 = arith.constant dense<0.000000e+00> : vector<8x8xf32>
    %132 = tpu.matmul %131, %120, %cst_47 {dimension_numbers = #tpu.dot_dimension_numbers<[1], [0], [0], [1], [0, 0, 1, 1], [], []>} : vector<8x8xf32>, vector<8x8xf32>, vector<8x8xf32> -> vector<8x8xf32>
    %133 = vector.extract_strided_slice %41 {offsets = [8, 16], sizes = [8, 8], strides = [1, 1]} : vector<16x96xf32> to vector<8x8xf32>
    %134 = vector.extract_strided_slice %41 {offsets = [8, 48], sizes = [8, 8], strides = [1, 1]} : vector<16x96xf32> to vector<8x8xf32>
    %135 = vector.extract_strided_slice %41 {offsets = [8, 80], sizes = [8, 8], strides = [1, 1]} : vector<16x96xf32> to vector<8x8xf32>
    %cst_48 = arith.constant dense<0.000000e+00> : vector<8x8xf32>
    %136 = tpu.matmul %133, %134, %cst_48 {dimension_numbers = #tpu.dot_dimension_numbers<[1], [1], [0], [0], [0, 0, 1, 0], [], []>} : vector<8x8xf32>, vector<8x8xf32>, vector<8x8xf32> -> vector<8x8xf32>
    %cst_49 = arith.constant dense<0xFF800000> : vector<8xf32>
    %137 = vector.multi_reduction <maximumf>, %136, %cst_49 [1] : vector<8x8xf32> to vector<8xf32>
    %138 = vector.shape_cast %137 : vector<8xf32> to vector<8x1xf32>
    %139 = vector.broadcast %138 : vector<8x1xf32> to vector<8x8xf32>
    %140 = arith.subf %136, %139 : vector<8x8xf32>
    %141 = math.exp %140 : vector<8x8xf32>
    %cst_50 = arith.constant dense<0.000000e+00> : vector<8xf32>
    %142 = vector.multi_reduction <add>, %141, %cst_50 [1] : vector<8x8xf32> to vector<8xf32>
    %143 = vector.shape_cast %142 : vector<8xf32> to vector<8x1xf32>
    %144 = tpu.reciprocal %143 : vector<8x1xf32> -> vector<8x1xf32>
    %145 = vector.broadcast %144 : vector<8x1xf32> to vector<8x8xf32>
    %146 = arith.mulf %141, %145 : vector<8x8xf32>
    %cst_51 = arith.constant dense<0.000000e+00> : vector<8x8xf32>
    %147 = tpu.matmul %146, %135, %cst_51 {dimension_numbers = #tpu.dot_dimension_numbers<[1], [0], [0], [1], [0, 0, 1, 1], [], []>} : vector<8x8xf32>, vector<8x8xf32>, vector<8x8xf32> -> vector<8x8xf32>
    %148 = vector.extract_strided_slice %41 {offsets = [8, 24], sizes = [8, 8], strides = [1, 1]} : vector<16x96xf32> to vector<8x8xf32>
    %149 = vector.extract_strided_slice %41 {offsets = [8, 56], sizes = [8, 8], strides = [1, 1]} : vector<16x96xf32> to vector<8x8xf32>
    %150 = vector.extract_strided_slice %41 {offsets = [8, 88], sizes = [8, 8], strides = [1, 1]} : vector<16x96xf32> to vector<8x8xf32>
    %cst_52 = arith.constant dense<0.000000e+00> : vector<8x8xf32>
    %151 = tpu.matmul %148, %149, %cst_52 {dimension_numbers = #tpu.dot_dimension_numbers<[1], [1], [0], [0], [0, 0, 1, 0], [], []>} : vector<8x8xf32>, vector<8x8xf32>, vector<8x8xf32> -> vector<8x8xf32>
    %cst_53 = arith.constant dense<0xFF800000> : vector<8xf32>
    %152 = vector.multi_reduction <maximumf>, %151, %cst_53 [1] : vector<8x8xf32> to vector<8xf32>
    %153 = vector.shape_cast %152 : vector<8xf32> to vector<8x1xf32>
    %154 = vector.broadcast %153 : vector<8x1xf32> to vector<8x8xf32>
    %155 = arith.subf %151, %154 : vector<8x8xf32>
    %156 = math.exp %155 : vector<8x8xf32>
    %cst_54 = arith.constant dense<0.000000e+00> : vector<8xf32>
    %157 = vector.multi_reduction <add>, %156, %cst_54 [1] : vector<8x8xf32> to vector<8xf32>
    %158 = vector.shape_cast %157 : vector<8xf32> to vector<8x1xf32>
    %159 = tpu.reciprocal %158 : vector<8x1xf32> -> vector<8x1xf32>
    %160 = vector.broadcast %159 : vector<8x1xf32> to vector<8x8xf32>
    %161 = arith.mulf %156, %160 : vector<8x8xf32>
    %cst_55 = arith.constant dense<0.000000e+00> : vector<8x8xf32>
    %162 = tpu.matmul %161, %150, %cst_55 {dimension_numbers = #tpu.dot_dimension_numbers<[1], [0], [0], [1], [0, 0, 1, 1], [], []>} : vector<8x8xf32>, vector<8x8xf32>, vector<8x8xf32> -> vector<8x8xf32>
    %163 = tpu.concatenate %117, %132, %147, %162 in 1 : vector<8x8xf32>, vector<8x8xf32>, vector<8x8xf32>, vector<8x8xf32> -> vector<8x32xf32>
    %164 = tpu.concatenate %102, %163 in 0 : vector<8x32xf32>, vector<8x32xf32> -> vector<16x32xf32>
    %cst_56 = arith.constant dense<0.000000e+00> : vector<16x32xf32>
    %165 = tpu.matmul %164, %1, %cst_56 {dimension_numbers = #tpu.dot_dimension_numbers<[1], [0], [0], [1], [0, 0, 1, 1], [], []>} : vector<16x32xf32>, vector<32x32xf32>, vector<16x32xf32> -> vector<16x32xf32>
    %166 = arith.addf %16, %165 : vector<16x32xf32>
    %167 = vector.broadcast %7 : vector<1x32xf32> to vector<16x32xf32>
    %168 = arith.addf %166, %167 : vector<16x32xf32>
    %cst_57 = arith.constant dense<0.000000e+00> : vector<16xf32>
    %169 = vector.multi_reduction <add>, %168, %cst_57 [1] : vector<16x32xf32> to vector<16xf32>
    %170 = vector.shape_cast %169 : vector<16xf32> to vector<16x1xf32>
    %cst_58 = arith.constant 3.200000e+01 : f32
    %171 = vector.broadcast %cst_58 : f32 to vector<16x1xf32>
    %172 = arith.divf %170, %171 : vector<16x1xf32>
    %173 = vector.broadcast %172 : vector<16x1xf32> to vector<16x32xf32>
    %174 = arith.subf %168, %173 : vector<16x32xf32>
    %175 = arith.mulf %174, %174 : vector<16x32xf32>
    %cst_59 = arith.constant dense<0.000000e+00> : vector<16xf32>
    %176 = vector.multi_reduction <add>, %175, %cst_59 [1] : vector<16x32xf32> to vector<16xf32>
    %177 = vector.shape_cast %176 : vector<16xf32> to vector<16x1xf32>
    %cst_60 = arith.constant 3.200000e+01 : f32
    %178 = vector.broadcast %cst_60 : f32 to vector<16x1xf32>
    %179 = arith.divf %177, %178 : vector<16x1xf32>
    %180 = vector.broadcast %172 : vector<16x1xf32> to vector<16x32xf32>
    %181 = arith.subf %168, %180 : vector<16x32xf32>
    %cst_61 = arith.constant 9.99999974E-6 : f32
    %182 = vector.broadcast %cst_61 : f32 to vector<16x1xf32>
    %183 = arith.addf %179, %182 : vector<16x1xf32>
    %184 = math.rsqrt %183 : vector<16x1xf32>
    %185 = vector.broadcast %184 : vector<16x1xf32> to vector<16x32xf32>
    %186 = arith.mulf %181, %185 : vector<16x32xf32>
    %187 = vector.broadcast %8 : vector<1x32xf32> to vector<16x32xf32>
    %188 = arith.mulf %186, %187 : vector<16x32xf32>
    %189 = vector.broadcast %9 : vector<1x32xf32> to vector<16x32xf32>
    %190 = arith.addf %188, %189 : vector<16x32xf32>
    %cst_62 = arith.constant dense<0.000000e+00> : vector<16x64xf32>
    %191 = tpu.matmul %190, %2, %cst_62 {dimension_numbers = #tpu.dot_dimension_numbers<[1], [0], [0], [1], [0, 0, 1, 1], [], []>} : vector<16x32xf32>, vector<32x64xf32>, vector<16x64xf32> -> vector<16x64xf32>
    %192 = vector.broadcast %10 : vector<1x64xf32> to vector<16x64xf32>
    %193 = arith.addf %191, %192 : vector<16x64xf32>
    %cst_63 = arith.constant 0.000000e+00 : f32
    %194 = vector.broadcast %cst_63 : f32 to vector<16x64xf32>
    %195 = arith.maximumf %193, %194 : vector<16x64xf32>
    %cst_64 = arith.constant dense<0.000000e+00> : vector<16x32xf32>
    %196 = tpu.matmul %195, %3, %cst_64 {dimension_numbers = #tpu.dot_dimension_numbers<[1], [0], [0], [1], [0, 0, 1, 1], [], []>} : vector<16x64xf32>, vector<64x32xf32>, vector<16x32xf32> -> vector<16x32xf32>
    %197 = arith.addf %168, %196 : vector<16x32xf32>
    %198 = vector.broadcast %11 : vector<1x32xf32> to vector<16x32xf32>
    %199 = arith.addf %197, %198 : vector<16x32xf32>
    %200 = vector.extract_strided_slice %199 {offsets = [0, 0], sizes = [8, 32], strides = [1, 1]} : vector<16x32xf32> to vector<8x32xf32>
    %c0_65 = arith.constant 0 : index
    %c0_66 = arith.constant 0 : index
    %c0_67 = arith.constant 0 : index
    %201 = vector.load %arg3[%c0_65, %c0_66, %c0_67] : memref<8x2x32xf32, #tpu.memory_space<vmem>>, vector<8x1x32xf32>
    %202 = vector.shape_cast %201 : vector<8x1x32xf32> to vector<8x32xf32>
    %203 = vector.shape_cast %200 : vector<8x32xf32> to vector<8x1x32xf32>
    tpu.vector_store %arg3[%c0_65, %c0_66, %c0_67], %203 {strides = array<i32>} : memref<8x2x32xf32, #tpu.memory_space<vmem>>, vector<8x1x32xf32>,
    %204 = vector.extract_strided_slice %199 {offsets = [8, 0], sizes = [8, 32], strides = [1, 1]} : vector<16x32xf32> to vector<8x32xf32>
    %c0_68 = arith.constant 0 : index
    %c1_69 = arith.constant 1 : index
    %c0_70 = arith.constant 0 : index
    %205 = vector.load %arg3[%c0_68, %c1_69, %c0_70] : memref<8x2x32xf32, #tpu.memory_space<vmem>>, vector<8x1x32xf32>
    %206 = vector.shape_cast %205 : vector<8x1x32xf32> to vector<8x32xf32>
    %207 = vector.shape_cast %204 : vector<8x32xf32> to vector<8x1x32xf32>
    tpu.vector_store %arg3[%c0_68, %c1_69, %c0_70], %207 {strides = array<i32>} : memref<8x2x32xf32, #tpu.memory_space<vmem>>, vector<8x1x32xf32>,
    return
  }
}

</mosaic_0001>

<bundles_post_ra>
// kernel: transformer_encoder_layer.1
= control target key start
LH: loop header
LB: loop body
LE: loop exit
PB: predicated region body
PF: predicated region fallthrough
CT: control target
= control target key end

     0   :  { %8 = vsyncpa [#allocation3], 0  ;;  %s2819_s0 = inlined_call_operand.hbm [shape: f32[8,2,32], index: 0, kind: input, shape index: {}]   ;;  %s2820_s1 = inlined_call_operand.hbm [shape: f32[160,128], index: 1, kind: input, shape index: {}]   ;;  %s2821_s2 = inlined_call_operand.hbm [shape: f32[8,128], index: 2, kind: input, shape index: {}]   ;;  %s2822_s3 = inlined_call_operand.hbm [shape: f32[8,2,32], index: 3, kind: output, shape index: {}]  }
   0x1   :  { %9 = vsyncpa [#allocation6], 0 }
   0x2   :  { %10 = vsyncpa [#allocation4], 0  ;;  %s2512_s12 = smov [#allocation5]   ;;  %s2418_s16 = scalar_lea.hbm %s2820_s1, 2560 }
   0x3   :  { %s28_s13 = sshll.u32 %s2512_s12, 4  ;;  %p2419_p0 = scmp.ne.s32.totalorder %s2820_s1, %s2418_s16  ;;  %s29_s13 = int_to_ptr.vmem [resolvable:$true] %s28_s13 }
   0x4   :  { %p2422_p1 = scmp.lt.u32.totalorder %s2418_s16, %s2820_s1 }
   0x6   :  { %p2424_p2 = pnand %p2422_p1, %p2419_p0 }
   0x8   :  { %2427 = shalt.err (!%p2424_p2)
}
   0x9   :  { %s2428_s21 = scalar_lea.vmem %s29_s13, 2560  ;;  %p2433_p4 = scmp.lt.s32.totalorder %s29_s13, %s29_s13 }
   0xa   :  { %p2429_p3 = scmp.ne.s32.totalorder %s29_s13, %s2428_s21  ;;  %p2434_p5 = scmp.lt.s32.totalorder %s2428_s21, %s2428_s21 }
   0xc   :  { %p2435_p6 = por %p2434_p5, %p2433_p4 }
   0xe   :  { %p2436_p7 = pnand %p2435_p6, %p2429_p3 }
  0x10   :  { %2439 = shalt.err (!%p2436_p7)
}
  0x11   :  { %s2513_s22 = smov 128   ;;  %s2514_s23 = smov 8  }
  0x12   :  { %34 = dma.hbm_to_vmem [thread:$0]  %s2820_s1, 2560, %s29_s13, [#allocation6], %s2513_s22, %s2513_s22, %s2514_s23  }
  0x13   :  { %s2515_s26 = smov [#allocation2]   ;;  %s2440_s30 = scalar_lea.hbm %s2819_s0, 256 }
  0x14   :  { %s16_s27 = sshll.u32 %s2515_s26, 4  ;;  %p2441_p8 = scmp.ne.s32.totalorder %s2819_s0, %s2440_s30  ;;  %s17_s27 = int_to_ptr.vmem [resolvable:$true] %s16_s27 }
  0x15   :  { %p2444_p9 = scmp.lt.u32.totalorder %s2440_s30, %s2819_s0 }
  0x17   :  { %p2446_p10 = pnand %p2444_p9, %p2441_p8 }
  0x19   :  { %2449 = shalt.err (!%p2446_p10)
}
  0x1a   :  { %s2450_s8 = scalar_lea.vmem %s17_s27, 256  ;;  %p2455_p12 = scmp.lt.s32.totalorder %s17_s27, %s17_s27 }
  0x1b   :  { %p2451_p11 = scmp.ne.s32.totalorder %s17_s27, %s2450_s8  ;;  %p2456_p13 = scmp.lt.s32.totalorder %s2450_s8, %s2450_s8 }
  0x1d   :  { %p2457_p0 = por %p2456_p13, %p2455_p12 }
  0x1f   :  { %p2458_p1 = pnand %p2457_p0, %p2451_p11 }
  0x21   :  { %2461 = shalt.err (!%p2458_p1)
}
  0x22   :  { %s2516_s1 = smov 32   ;;  %s2517_s9 = smov 2  }
  0x23   :  { %22 = dma.hbm_to_vmem [thread:$0]  %s2819_s0, 256, %s17_s27, [#allocation3], %s2516_s1, %s2516_s1, %s2517_s9  }
  0x24   :  { %s2518_s12 = smov [#allocation7]   ;;  %s2462_s16 = scalar_lea.hbm %s2821_s2, 128 }
  0x25   :  { %s41_s13 = sshll.u32 %s2518_s12, 4  ;;  %p2463_p2 = scmp.ne.s32.totalorder %s2821_s2, %s2462_s16  ;;  %s42_s13 = int_to_ptr.vmem [resolvable:$true] %s41_s13 }
  0x26   :  { %p2466_p3 = scmp.lt.u32.totalorder %s2462_s16, %s2821_s2 }
  0x28   :  { %p2468_p4 = pnand %p2466_p3, %p2463_p2 }
  0x2a   :  { %2471 = shalt.err (!%p2468_p4)
}
  0x2b   :  { %s2472_s21 = scalar_lea.vmem %s42_s13, 128  ;;  %p2477_p6 = scmp.lt.s32.totalorder %s42_s13, %s42_s13 }
  0x2c   :  { %p2473_p5 = scmp.ne.s32.totalorder %s42_s13, %s2472_s21  ;;  %p2478_p7 = scmp.lt.s32.totalorder %s2472_s21, %s2472_s21 }
  0x2e   :  { %p2479_p8 = por %p2478_p7, %p2477_p6 }
  0x30   :  { %p2480_p9 = pnand %p2479_p8, %p2473_p5 }
  0x32   :  { %2483 = shalt.err (!%p2480_p9)
}
  0x33   :  { %44 = dma.hbm_to_vmem [thread:$0]  %s2821_s2, 128, %s42_s13, [#allocation6]  }
  0x34   :  { %2506 = dma.done.wait [#allocation3], 256  }
  0x35   :  { %2507 = vsyncadd [#allocation3], 4294967040 }
  0x36   :  { %2508 = dma.done.wait [#allocation6], 2688  }
  0x37   :  { %2509 = vsyncadd [#allocation6], 4294964608  ;;  %vm107_vm0 = vcmask 1041409   ;;  %vm110_vm1 = vcmask 1042434   ;;  %vm113_vm2 = vcmask 1043459   ;;  %vm116_vm3 = vcmask 1044484  }
  0x38   :  { %v82_v0 = vld [vmem:[#allocation2] sm:$0x1]  ;;  %v83_v1 = vld [vmem:[#allocation2 + $0x2] sm:$0x1]  ;;  %v84_v2 = vld [vmem:[#allocation2 + $0x4] sm:$0x1] }
  0x39   :  { %v85_v3 = vld [vmem:[#allocation2 + $0x6] sm:$0x1]  ;;  %v86_v4 = vld [vmem:[#allocation2 + $0x8] sm:$0x1]  ;;  %v87_v5 = vld [vmem:[#allocation2 + $0xa] sm:$0x1] }
  0x3a   :  { %v88_v6 = vld [vmem:[#allocation2 + $0xc] sm:$0x1]  ;;  %v106_v7 = vrot.slane %v83_v1, 7  ;;  %v109_v8 = vrot.slane %v84_v2, 6  ;;  %vm119_vm4 = vcmask 1045509   ;;  %vm122_vm5 = vcmask 1046534  }
  0x3b   :  { %v89_v9 = vld [vmem:[#allocation2 + $0xe] sm:$0x1]  ;;  %v112_v10 = vrot.slane %v85_v3, 5  ;;  %v115_v11 = vrot.slane %v86_v4, 4  ;;  %v118_v12 = vrot.slane %v87_v5, 3  ;;  %v121_v13 = vrot.slane %v88_v6, 2 }
  0x3c   :  { %v108_v14 = vsel %vm107_vm0, %v106_v7, %v82_v0  ;;  %v90_v15 = vld [vmem:[#allocation2 + $0x1] sm:$0x1]  ;;  %v91_v16 = vld [vmem:[#allocation2 + $0x3] sm:$0x1]  ;;  %v92_v17 = vld [vmem:[#allocation2 + $0x5] sm:$0x1] }
  0x3d   :  { %v111_v18 = vsel %vm110_vm1, %v109_v8, %v108_v14  ;;  %v93_v19 = vld [vmem:[#allocation2 + $0x7] sm:$0x1]  ;;  %v94_v20 = vld [vmem:[#allocation2 + $0x9] sm:$0x1]  ;;  %v95_v21 = vld [vmem:[#allocation2 + $0xb] sm:$0x1] }
  0x3e   :  { %v114_v22 = vsel %vm113_vm2, %v112_v10, %v111_v18  ;;  %v124_v23 = vrot.slane %v89_v9, 1  ;;  %v96_v24 = vld [vmem:[#allocation2 + $0xd] sm:$0x1]  ;;  %v136_v25 = vrot.slane %v91_v16, 7  ;;  %v138_v26 = vrot.slane %v92_v17, 6  ;;  %v54_v56 = vld [vmem:[#allocation5] sm:$0xff] }
  0x3f   :  { %v117_v27 = vsel %vm116_vm3, %v115_v11, %v114_v22  ;;  %vm125_vm6 = vcmask 1047559   ;;  %v97_v28 = vld [vmem:[#allocation2 + $0xf] sm:$0x1]  ;;  %v140_v29 = vrot.slane %v93_v19, 5  ;;  %v142_v30 = vrot.slane %v94_v20, 4  ;;  %v55_v57 = vld [vmem:[#allocation5 + $0x8] sm:$0xff] }
  0x40   :  { %v120_v31 = vsel %vm119_vm4, %v118_v12, %v117_v27  ;;  %vm151_vm7 = vcmask 261120   ;;  %v137_v32 = vsel %vm107_vm0, %v136_v25, %v90_v15  ;;  %v144_v33 = vrot.slane %v95_v21, 3  ;;  %v56_v58 = vld [vmem:[#allocation5 + $0x10] sm:$0xff]  ;;  %v57_v60 = vld [vmem:[#allocation5 + $0x18] sm:$0xff]  ;;  %v2082_v5 = vld [vmem:[#allocation7] ss:$0 sm:$0xff] }
  0x41   :  { %v123_v34 = vsel %vm122_vm5, %v121_v13, %v120_v31  ;;  %v139_v35 = vsel %vm110_vm1, %v138_v26, %v137_v32  ;;  %v146_v36 = vrot.slane %v96_v24, 2  ;;  %v148_v39 = vrot.slane %v97_v28, 1  ;;  %v2083_v7 = vld [vmem:[#allocation7 + $0x1] ss:$0 sm:$0xff]  ;;  %v2084_v15 = vld [vmem:[#allocation7 + $0x2] ss:$0 sm:$0xff] }
  0x42   :  { %v2605_v37 = vsel %vm125_vm6, %v124_v23, %v123_v34  ;;  %v141_v38 = vsel %vm113_vm2, %v140_v29, %v139_v35  ;;  %v2314_v59 = vpack.c.bf16 %v55_v57, %v54_v56  ;;  %v2318_v61 = vpack.c.bf16 %v57_v60, %v56_v58  ;;  %s2521_s2 = smov 88   ;;  %s2522_s24 = smov 96  }
  0x43   :  { %v152_v40 = vsel %vm151_vm7, %v2605_v37, 0.0  ;;  %v143_v41 = vsel %vm116_vm3, %v142_v30, %v141_v38  ;;  %v2519_v14 = vmov 0.0   ;;  %vm2520_vm8 = vmmov 0   ;;  %s2523_s25 = smov 120   ;;  %s2524_s26 = smov 112  }
  0x44   :  { %153 = vadd.xlane.f32.xlu0 %v152_v40  ;;  %v145_v42 = vsel %vm119_vm4, %v144_v33, %v143_v41  ;;  %2315 = vmatprep.subr.bf16.mxu1 %v2314_v59  ;;  %s2525_s27 = smov 80   ;;  %s2526_s28 = smov 104   ;;  %vm279_vm9 = vcmask 64512   ;;  %vm949_vm10 = vcmask 130048   ;;  %vm951_vm11 = vcmask 195584  }
  0x45   :  { %v147_v43 = vsel %vm122_vm5, %v146_v36, %v145_v42  ;;  %2317 = vmatpush3.bf16.msra.mxu1 %v2314_v59  ;;  %2203 = vmatprep.subr.mxu0 %v2519_v14  ;;  %s2527_s29 = smov 72   ;;  %s2528_s30 = smov 64   ;;  %vm1841_vm12 = vcmask 523264   ;;  %vm1989_vm13 = vcmask 253952  }
  0x46   :  { %v2614_v44 = vsel %vm125_vm6, %v148_v39, %v147_v43  ;;  %2319 = vmatprep.subr.bf16.mxu1 %v2318_v61  ;;  %2205 = vmatprep.mubr.msk.f32.mxu0 %vm2520_vm8, %v2519_v14  ;;  %s2529_s4 = smov 48   ;;  %s2530_s5 = smov 40  }
  0x47   :  { %v155_v45 = vsel %vm151_vm7, %v2614_v44, 0.0  ;;  %s2531_s6 = smov 56   ;;  %s2532_s7 = smov 16  }
  0x48   :  { %156 = vadd.xlane.f32.xlu0 %v155_v45  ;;  %s2533_s8 = smov 24  }
  0x49   :  { %2321 = vmatpush3.bf16.msra.mxu1 %v2318_v61 }
  0x4a   :  { %2193 = vmatprep.subr.mxu1 %v2519_v14 }
  0xd1   :  { %v154_v46 = vpop.xlane.xlu0 %153 }
  0xd2   :  { %v159_v47 = vmul.f32 0.03125, %v154_v46 }
  0xd4   :  { %v161_v48 = vsub.f32 %v2605_v37, %v159_v47 }
  0xd5   :  { %v157_v49 = vpop.xlane.xlu0 %156 }
  0xd6   :  { %v160_v50 = vmul.f32 0.03125, %v157_v49  ;;  %v163_v51 = vmul.f32 %v161_v48, %v161_v48 }
  0xd8   :  { %v162_v52 = vsub.f32 %v2614_v44, %v160_v50  ;;  %v165_v53 = vsel %vm151_vm7, %v163_v51, 0.0 }
  0xd9   :  { %166 = vadd.xlane.f32.xlu1 %v165_v53 }
  0xda   :  { %v164_v54 = vmul.f32 %v162_v52, %v162_v52 }
  0xdc   :  { %v168_v55 = vsel %vm151_vm7, %v164_v54, 0.0 }
  0xdd   :  { %169 = vadd.xlane.f32.xlu1 %v168_v55 }
 0x166   :  { %v167_v62 = vpop.xlane.xlu1 %166 }
 0x167   :  { %v171_v63 = vmul.f32 0.03125, %v167_v62 }
 0x169   :  { %v173_v0 = vadd.f32 1e-05, %v171_v63 }
 0x16a   :  { %v170_v1 = vpop.xlane.xlu1 %169 }
 0x16b   :  { %2378 = vrsqrt.f32 %v173_v0  ;;  %v172_v2 = vmul.f32 0.03125, %v170_v1 }
 0x16d   :  { %v174_v3 = vadd.f32 1e-05, %v172_v2 }
 0x16f   :  { %2380 = vrsqrt.f32 %v174_v3 }
 0x175   :  { %v2379_v4 = vpop.eup %2378 }
 0x176   :  { %v177_v6 = vmul.f32 %v2379_v4, %v161_v48 }
 0x178   :  { %v183_v8 = vmul.f32 %v2082_v5, %v177_v6 }
 0x179   :  { %v2381_v9 = vpop.eup %2380 }
 0x17a   :  { %v178_v10 = vmul.f32 %v2381_v9, %v162_v52  ;;  %v189_v11 = vadd.f32 %v2083_v7, %v183_v8 }
 0x17c   :  { %v184_v12 = vmul.f32 %v2082_v5, %v178_v10  ;;  %2190 = vmatprep.mubr.msk.f32.mxu1 %vm151_vm7, %v189_v11 }
 0x17e   :  { %v190_v13 = vadd.f32 %v2083_v7, %v184_v12 }
 0x180   :  { %2191 = vmatmul.mubr.msk.f32.vlgmr.msra.gmra.mrb[0].mxu1 %vm151_vm7, %v190_v13 }
 0x181   :  { %2195 = vmatprep.mubr.msk.f32.mxu1 %vm2520_vm8, %v2519_v14 }
 0x253   :  { %v2192_v16 = vpop.f32.mrb[0].mxu1 }
 0x254   :  { %v267_v17 = vpop.f32.mrb[1].mxu1  ;;  %v2638_v19 = vadd.f32 %v2192_v16, %v2084_v15 }
 0x255   :  { %v2630_v18 = vadd.f32 %v2084_v15, %v267_v17 }
 0x257   :  { %443 = vrot.lane.b32.xlu1 %v2630_v18, %s2521_s2  ;;  %277 = vrot.lane.b32.xlu0 %v2630_v18, %s2522_s24 }
 0x25b   :  { %441 = vrot.lane.b32.xlu1 %v2630_v18, %s2523_s25  ;;  %606 = vrot.lane.b32.xlu0 %v2630_v18, %s2524_s26 }
 0x25f   :  { %608 = vrot.lane.b32.xlu1 %v2630_v18, %s2525_s27  ;;  %771 = vrot.lane.b32.xlu0 %v2630_v18, %s2526_s28 }
 0x263   :  { %773 = vrot.lane.b32.xlu1 %v2630_v18, %s2527_s29  ;;  %1119 = vrot.lane.b32.xlu0 %v2638_v19, %s2521_s2 }
 0x267   :  { %954 = vrot.lane.b32.xlu1 %v2638_v19, %s2522_s24  ;;  %1284 = vrot.lane.b32.xlu0 %v2638_v19, %s2525_s27 }
 0x26b   :  { %1117 = vrot.lane.b32.xlu1 %v2638_v19, %s2523_s25  ;;  %1449 = vrot.lane.b32.xlu0 %v2638_v19, %s2527_s29 }
 0x26f   :  { %1282 = vrot.lane.b32.xlu1 %v2638_v19, %s2524_s26 }
 0x273   :  { %1447 = vrot.lane.b32.xlu1 %v2638_v19, %s2526_s28 }
 0x2c9   :  { %v444_v20 = vpop.permute.xlu1 %443  ;;  %v278_v21 = vpop.permute.xlu0 %277 }
 0x2ca   :  { %2194 = vmatpush3.xpose.msk.msra.mxu1 %vm279_vm9, %v278_v21  ;;  %2204 = vmatpush3.xpose.msk.msra.mxu0 %vm279_vm9, %v444_v20 }
 0x2cb   :  { %2213 = vmatprep.subr.mxu0 %v2519_v14  ;;  %2198 = vmatprep.subr.mxu1 %v2519_v14 }
 0x2cd   :  { %v442_v22 = vpop.permute.xlu1 %441  ;;  %2196 = vmatmul.mubr.msk.f32.vlgmr.msra.gmra.mrb[2].mxu1 %vm279_vm9, %v2630_v18  ;;  %v607_v23 = vpop.permute.xlu0 %606 }
 0x2ce   :  { %2206 = vmatmul.mubr.msk.f32.vlgmr.msra.gmra.mrb[0].mxu0 %vm279_vm9, %v442_v22  ;;  %2200 = vmatprep.mubr.msk.f32.mxu1 %vm2520_vm8, %v2519_v14 }
 0x2cf   :  { %2215 = vmatprep.mubr.msk.f32.mxu0 %vm2520_vm8, %v2519_v14 }
 0x2d1   :  { %v609_v24 = vpop.permute.xlu1 %608  ;;  %v772_v25 = vpop.permute.xlu0 %771 }
 0x2d2   :  { %2214 = vmatpush3.xpose.msk.msra.mxu0 %vm279_vm9, %v609_v24 }
 0x2d3   :  { %2223 = vmatprep.subr.mxu0 %v2519_v14 }
 0x2d5   :  { %v774_v26 = vpop.permute.xlu1 %773  ;;  %2216 = vmatmul.mubr.msk.f32.vlgmr.msra.gmra.mrb[2].mxu0 %vm279_vm9, %v607_v23  ;;  %v1120_v27 = vpop.permute.xlu0 %1119 }
 0x2d6   :  { %2224 = vmatpush3.xpose.msk.msra.mxu0 %vm279_vm9, %v774_v26  ;;  %2225 = vmatprep.mubr.msk.f32.mxu0 %vm2520_vm8, %v2519_v14 }
 0x2d7   :  { %2233 = vmatprep.subr.mxu0 %v2519_v14 }
 0x2d9   :  { %v955_v28 = vpop.permute.xlu1 %954  ;;  %2226 = vmatmul.mubr.msk.f32.vlgmr.msra.gmra.mrb[4].mxu0 %vm279_vm9, %v772_v25  ;;  %v1285_v30 = vpop.permute.xlu0 %1284 }
 0x2da   :  { %2234 = vmatpush3.xpose.msk.msra.mxu0 %vm279_vm9, %v955_v28  ;;  %2235 = vmatprep.mubr.msk.f32.mxu0 %vm2520_vm8, %v2519_v14 }
 0x2db   :  { %2243 = vmatprep.subr.mxu0 %v2519_v14 }
 0x2dd   :  { %v1118_v29 = vpop.permute.xlu1 %1117  ;;  %2236 = vmatmul.mubr.msk.f32.vlgmr.msra.gmra.mrb[6].mxu0 %vm279_vm9, %v2638_v19  ;;  %v1450_v32 = vpop.permute.xlu0 %1449 }
 0x2de   :  { %2244 = vmatpush3.xpose.msk.msra.mxu0 %vm279_vm9, %v1120_v27  ;;  %2245 = vmatprep.mubr.msk.f32.mxu0 %vm2520_vm8, %v2519_v14 }
 0x2df   :  { %2253 = vmatprep.subr.mxu0 %v2519_v14 }
 0x2e1   :  { %2246 = vmatmul.mubr.msk.f32.vlgmr.msra.gmra.mrb[8].mxu0 %vm279_vm9, %v1118_v29  ;;  %v1283_v31 = vpop.permute.xlu1 %1282 }
 0x2e2   :  { %2254 = vmatpush3.xpose.msk.msra.mxu0 %vm279_vm9, %v1285_v30  ;;  %2255 = vmatprep.mubr.msk.f32.mxu0 %vm2520_vm8, %v2519_v14 }
 0x2e3   :  { %2263 = vmatprep.subr.mxu0 %v2519_v14 }
 0x2e5   :  { %2256 = vmatmul.mubr.msk.f32.vlgmr.msra.gmra.mrb[10].mxu0 %vm279_vm9, %v1283_v31  ;;  %v1448_v33 = vpop.permute.xlu1 %1447 }
 0x2e6   :  { %2264 = vmatpush3.xpose.msk.msra.mxu0 %vm279_vm9, %v1450_v32  ;;  %2265 = vmatprep.mubr.msk.f32.mxu0 %vm2520_vm8, %v2519_v14 }
 0x2e9   :  { %2266 = vmatmul.mubr.msk.f32.vlgmr.msra.gmra.mrb[12].mxu0 %vm279_vm9, %v1448_v33 }
 0x3a0   :  { %v350_v34 = vpop.f32.mrb[2].mxu1 }
 0x3a1   :  { %v2197_v35 = vpop.f32.mrb[3].mxu1  ;;  %v515_v36 = vpop.f32.mrb[0].mxu0  ;;  %v354_v38 = vsel %vm279_vm9, %v350_v34, -inf }
 0x3a2   :  { %v2207_v39 = vpop.f32.mrb[1].mxu0  ;;  %355 = vmax.xlane.f32.xlu0 %v354_v38  ;;  %v519_v40 = vsel %vm279_vm9, %v515_v36, -inf }
 0x3a3   :  { %520 = vmax.xlane.f32.xlu1 %v519_v40 }
 0x3a8   :  { %v680_v41 = vpop.f32.mrb[2].mxu0 }
 0x3a9   :  { %v2217_v42 = vpop.f32.mrb[3].mxu0  ;;  %v684_v43 = vsel %vm279_vm9, %v680_v41, -inf }
 0x3aa   :  { %685 = vmax.xlane.f32.xlu0 %v684_v43 }
 0x3ac   :  { %v845_v45 = vpop.f32.mrb[4].mxu0 }
 0x3ad   :  { %v2227_v46 = vpop.f32.mrb[5].mxu0  ;;  %v849_v47 = vsel %vm279_vm9, %v845_v45, -inf }
 0x3ae   :  { %850 = vmax.xlane.f32.xlu0 %v849_v47 }
 0x3b0   :  { %v1026_v48 = vpop.f32.mrb[6].mxu0 }
 0x3b1   :  { %v2237_v49 = vpop.f32.mrb[7].mxu0  ;;  %v1030_v50 = vsel %vm279_vm9, %v1026_v48, -inf }
 0x3b2   :  { %1031 = vmax.xlane.f32.xlu0 %v1030_v50 }
 0x3b4   :  { %v1191_v51 = vpop.f32.mrb[8].mxu0 }
 0x3b5   :  { %v2247_v52 = vpop.f32.mrb[9].mxu0  ;;  %v1195_v53 = vsel %vm279_vm9, %v1191_v51, -inf }
 0x3b6   :  { %1196 = vmax.xlane.f32.xlu1 %v1195_v53 }
 0x3b8   :  { %v1356_v54 = vpop.f32.mrb[10].mxu0 }
 0x3b9   :  { %v2257_v55 = vpop.f32.mrb[11].mxu0  ;;  %v1360_v56 = vsel %vm279_vm9, %v1356_v54, -inf }
 0x3ba   :  { %1361 = vmax.xlane.f32.xlu0 %v1360_v56 }
 0x3bc   :  { %v2694_v57 = vpop.f32.mrb[12].mxu0 }
 0x3bd   :  { %v2267_v58 = vpop.f32.mrb[13].mxu0  ;;  %v1525_v59 = vsel %vm279_vm9, %v2694_v57, -inf }
 0x3c7   :  { %365 = vrot.lane.b32.xlu1 %v2630_v18, %s2528_s30 }
 0x3eb   :  { %1526 = vmax.xlane.f32.xlu1 %v1525_v59 }
 0x3fc   :  { %695 = vrot.lane.b32.xlu1 %v2630_v18, %s2529_s4 }
 0x400   :  { %860 = vrot.lane.b32.xlu1 %v2630_v18, %s2530_s5 }
 0x404   :  { %1041 = vrot.lane.b32.xlu1 %v2638_v19, %s2528_s30 }
 0x42f   :  { %v356_v60 = vpop.xlane.xlu0 %355 }
 0x430   :  { %v357_v61 = vsub.f32 %v350_v34, %v356_v60  ;;  %v521_v62 = vpop.xlane.xlu1 %520 }
 0x431   :  { %v522_v63 = vsub.f32 %v515_v36, %v521_v62 }
 0x432   :  { %v358_v0 = vmul.f32 1.442695, %v357_v61 }
 0x433   :  { %v523_v1 = vmul.f32 1.442695, %v522_v63 }
 0x434   :  { %2382 = vpow2.f32 %v358_v0 }
 0x435   :  { %2384 = vpow2.f32 %v523_v1 }
 0x437   :  { %v686_v2 = vpop.xlane.xlu0 %685 }
 0x438   :  { %v687_v15 = vsub.f32 %v680_v41, %v686_v2 }
 0x43a   :  { %v688_v17 = vmul.f32 1.442695, %v687_v15 }
 0x43b   :  { %v851_v3 = vpop.xlane.xlu0 %850 }
 0x43c   :  { %v852_v4 = vsub.f32 %v845_v45, %v851_v3 }
 0x43e   :  { %v2383_v5 = vpop.eup %2382  ;;  %v853_v6 = vmul.f32 1.442695, %v852_v4 }
 0x43f   :  { %v2704_v7 = vpop.eup %2384  ;;  %v360_v8 = vsel %vm279_vm9, %v2383_v5, 0.0  ;;  %v1032_v16 = vpop.xlane.xlu0 %1031 }
 0x440   :  { %2386 = vpow2.f32 %v853_v6  ;;  %361 = vadd.xlane.f32.xlu0 %v360_v8  ;;  %v525_v9 = vsel %vm279_vm9, %v2704_v7, 0.0  ;;  %v1033_v20 = vsub.f32 %v1026_v48, %v1032_v16 }
 0x441   :  { %526 = vadd.xlane.f32.xlu1 %v525_v9  ;;  %2388 = vpow2.f32 %v688_v17  ;;  %v61_v17 = vld [vmem:[#allocation5 + $0x38] sm:$0xff] }
 0x442   :  { %v1034_v22 = vmul.f32 1.442695, %v1033_v20 }
 0x443   :  { %v1197_v10 = vpop.xlane.xlu1 %1196 }
 0x444   :  { %2390 = vpow2.f32 %v1034_v22  ;;  %v1198_v24 = vsub.f32 %v1191_v51, %v1197_v10 }
 0x446   :  { %v1199_v26 = vmul.f32 1.442695, %v1198_v24 }
 0x447   :  { %v366_v11 = vpop.permute.xlu1 %365  ;;  %v1362_v21 = vpop.xlane.xlu0 %1361 }
 0x448   :  { %2199 = vmatpush3.msra.mxu1 %v366_v11  ;;  %v1363_v23 = vsub.f32 %v1356_v54, %v1362_v21  ;;  %v58_v11 = vld [vmem:[#allocation5 + $0x20] sm:$0xff] }
 0x449   :  { %2208 = vmatprep.subr.mxu1 %v2519_v14 }
 0x44a   :  { %v2710_v12 = vpop.eup %2386  ;;  %v1364_v25 = vmul.f32 1.442695, %v1363_v23 }
 0x44b   :  { %v855_v13 = vsel %vm279_vm9, %v2710_v12, 0.0  ;;  %v2389_v27 = vpop.eup %2388 }
 0x44c   :  { %856 = vadd.xlane.f32.xlu1 %v855_v13  ;;  %2392 = vpow2.f32 %v1364_v25  ;;  %v690_v28 = vsel %vm279_vm9, %v2389_v27, 0.0 }
 0x44d   :  { %2394 = vpow2.f32 %v1199_v26 }
 0x456   :  { %530 = vrot.lane.b32.xlu0 %v2630_v18, %s2531_s6  ;;  %v2391_v18 = vpop.eup %2390 }
 0x457   :  { %v1036_v30 = vsel %vm279_vm9, %v2391_v18, 0.0  ;;  %v2718_v31 = vpop.eup %2392 }
 0x458   :  { %v1366_v34 = vsel %vm279_vm9, %v2718_v31, 0.0  ;;  %v2395_v35 = vpop.eup %2394 }
 0x459   :  { %v1201_v36 = vsel %vm279_vm9, %v2395_v35, 0.0 }
 0x45d   :  { %1206 = vrot.lane.b32.xlu1 %v2638_v19, %s2531_s6 }
 0x475   :  { %691 = vadd.xlane.f32.xlu0 %v690_v28 }
 0x478   :  { %v1527_v29 = vpop.xlane.xlu1 %1526 }
 0x479   :  { %v1528_v32 = vsub.f32 %v2694_v57, %v1527_v29  ;;  %1037 = vadd.xlane.f32.xlu0 %v1036_v30 }
 0x47b   :  { %v1529_v33 = vmul.f32 1.442695, %v1528_v32 }
 0x47c   :  { %v696_v40 = vpop.permute.xlu1 %695 }
 0x47d   :  { %2396 = vpow2.f32 %v1529_v33  ;;  %1367 = vadd.xlane.f32.xlu0 %v1366_v34 }
 0x480   :  { %v861_v41 = vpop.permute.xlu1 %860 }
 0x481   :  { %1202 = vadd.xlane.f32.xlu1 %v1201_v36 }
 0x484   :  { %v1042_v42 = vpop.permute.xlu1 %1041 }
 0x487   :  { %v2724_v38 = vpop.eup %2396 }
 0x488   :  { %v1531_v39 = vsel %vm279_vm9, %v2724_v38, 0.0 }
 0x489   :  { %1532 = vadd.xlane.f32.xlu0 %v1531_v39 }
 0x492   :  { %1536 = vrot.lane.b32.xlu1 %v2638_v19, %s2530_s5 }
 0x49f   :  { %1371 = vrot.lane.b32.xlu0 %v2638_v19, %s2529_s4 }
 0x4cd   :  { %v362_v43 = vpop.xlane.xlu0 %361 }
 0x4ce   :  { %2398 = vrcp.f32 %v362_v43  ;;  %v527_v45 = vpop.xlane.xlu1 %526  ;;  %v2113_v43 = vld [vmem:[#allocation7 + $0x3] ss:$0 sm:$0xff] }
 0x4cf   :  { %2400 = vrcp.f32 %v527_v45 }
 0x4d1   :  { %v531_v49 = vpop.permute.xlu0 %530 }
 0x4d8   :  { %v2399_v46 = vpop.eup %2398 }
 0x4d9   :  { %v364_v47 = vmul.f32 %v2399_v46, %v2383_v5  ;;  %v2401_v48 = vpop.eup %2400  ;;  %v857_v19 = vpop.xlane.xlu1 %856 }
 0x4da   :  { %v529_v50 = vmul.f32 %v2401_v48, %v2704_v7 }
 0x4db   :  { %2201 = vmatmul.mubr.msk.f32.vlgmr.msra.gmra.mrb[4].mxu1 %vm279_vm9, %v364_v47 }
 0x4dc   :  { %2209 = vmatpush3.msra.mxu1 %v531_v49  ;;  %2210 = vmatprep.mubr.msk.f32.mxu1 %vm2520_vm8, %v2519_v14 }
 0x4dd   :  { %2218 = vmatprep.subr.mxu1 %v2519_v14  ;;  %v1207_v53 = vpop.permute.xlu1 %1206 }
 0x4df   :  { %2211 = vmatmul.mubr.msk.f32.vlgmr.msra.gmra.mrb[6].mxu1 %vm279_vm9, %v529_v50 }
 0x4e0   :  { %2219 = vmatpush3.msra.mxu1 %v696_v40  ;;  %2220 = vmatprep.mubr.msk.f32.mxu1 %vm2520_vm8, %v2519_v14 }
 0x4e1   :  { %2228 = vmatprep.subr.mxu1 %v2519_v14 }
 0x502   :  { %v692_v51 = vpop.xlane.xlu0 %691 }
 0x503   :  { %2402 = vrcp.f32 %v692_v51 }
 0x504   :  { %2404 = vrcp.f32 %v857_v19 }
 0x506   :  { %v1038_v52 = vpop.xlane.xlu0 %1037 }
 0x507   :  { %2406 = vrcp.f32 %v1038_v52 }
 0x50a   :  { %v1368_v56 = vpop.xlane.xlu0 %1367 }
 0x50d   :  { %v2403_v54 = vpop.eup %2402 }
 0x50e   :  { %v694_v55 = vmul.f32 %v2403_v54, %v2389_v27  ;;  %v1203_v57 = vpop.xlane.xlu1 %1202  ;;  %v2405_v58 = vpop.eup %2404 }
 0x50f   :  { %2408 = vrcp.f32 %v1203_v57  ;;  %v859_v59 = vmul.f32 %v2405_v58, %v2710_v12  ;;  %v59_v12 = vld [vmem:[#allocation5 + $0x28] sm:$0xff] }
 0x510   :  { %2221 = vmatmul.mubr.msk.f32.vlgmr.msra.gmra.mrb[8].mxu1 %vm279_vm9, %v694_v55  ;;  %2410 = vrcp.f32 %v1368_v56  ;;  %v2322_v15 = vpack.c.bf16 %v59_v12, %v58_v11 }
 0x511   :  { %2229 = vmatpush3.msra.mxu1 %v861_v41  ;;  %2230 = vmatprep.mubr.msk.f32.mxu1 %vm2520_vm8, %v2519_v14  ;;  %v2407_v60 = vpop.eup %2406 }
 0x512   :  { %2238 = vmatprep.subr.mxu1 %v2519_v14  ;;  %v1040_v61 = vmul.f32 %v2407_v60, %v2391_v18  ;;  %v1537_v4 = vpop.permute.xlu1 %1536  ;;  %2323 = vmatprep.subr.bf16.mxu0 %v2322_v15  ;;  %v62_v60 = vld [vmem:[#allocation5 + $0x40] sm:$0xff] }
 0x513   :  { %2325 = vmatpush3.bf16.msra.mxu0 %v2322_v15 }
 0x514   :  { %2231 = vmatmul.mubr.msk.f32.vlgmr.msra.gmra.mrb[10].mxu1 %vm279_vm9, %v859_v59 }
 0x515   :  { %2239 = vmatpush3.msra.mxu1 %v1042_v42  ;;  %2240 = vmatprep.mubr.msk.f32.mxu1 %vm2520_vm8, %v2519_v14 }
 0x516   :  { %v1533_v62 = vpop.xlane.xlu0 %1532  ;;  %2248 = vmatprep.subr.mxu1 %v2519_v14 }
 0x517   :  { %2412 = vrcp.f32 %v1533_v62 }
 0x518   :  { %2241 = vmatmul.mubr.msk.f32.vlgmr.msra.gmra.mrb[12].mxu1 %vm279_vm9, %v1040_v61  ;;  %v63_v61 = vld [vmem:[#allocation5 + $0x48] sm:$0xff] }
 0x519   :  { %v2409_v63 = vpop.eup %2408  ;;  %2249 = vmatpush3.msra.mxu1 %v1207_v53  ;;  %2250 = vmatprep.mubr.msk.f32.mxu1 %vm2520_vm8, %v2519_v14  ;;  %v2330_v62 = vpack.c.bf16 %v63_v61, %v62_v60 }
 0x51a   :  { %v1205_v0 = vmul.f32 %v2409_v63, %v2395_v35  ;;  %v1372_v1 = vpop.permute.xlu0 %1371  ;;  %2258 = vmatprep.subr.mxu1 %v2519_v14  ;;  %v2411_v2 = vpop.eup %2410  ;;  %v64_v63 = vld [vmem:[#allocation5 + $0x50] sm:$0xff] }
 0x51b   :  { %v1370_v3 = vmul.f32 %v2411_v2, %v2718_v31  ;;  %v66_v2 = vld [vmem:[#allocation5 + $0x60] sm:$0xff] }
 0x51c   :  { %2251 = vmatmul.mubr.msk.f32.vlgmr.msra.gmra.mrb[14].mxu1 %vm279_vm9, %v1205_v0  ;;  %v65_v0 = vld [vmem:[#allocation5 + $0x58] sm:$0xff] }
 0x51d   :  { %2259 = vmatpush3.msra.mxu1 %v1372_v1  ;;  %2260 = vmatprep.mubr.msk.f32.mxu1 %vm2520_vm8, %v2519_v14  ;;  %v2334_v1 = vpack.c.bf16 %v65_v0, %v64_v63 }
 0x51e   :  { %2268 = vmatprep.subr.mxu1 %v2519_v14 }
 0x520   :  { %2261 = vmatmul.mubr.msk.f32.vlgmr.msra.gmra.mrb[16].mxu1 %vm279_vm9, %v1370_v3  ;;  %v67_v3 = vld [vmem:[#allocation5 + $0x68] sm:$0xff] }
 0x521   :  { %v2413_v5 = vpop.eup %2412  ;;  %2269 = vmatpush3.msra.mxu1 %v1537_v4  ;;  %2270 = vmatprep.mubr.msk.f32.mxu1 %vm2520_vm8, %v2519_v14  ;;  %v60_v14 = vld [vmem:[#allocation5 + $0x30] sm:$0xff] }
 0x522   :  { %v1535_v6 = vmul.f32 %v2413_v5, %v2724_v38  ;;  %v2326_v21 = vpack.c.bf16 %v61_v17, %v60_v14  ;;  %2331 = vmatprep.subr.bf16.mxu1 %v2330_v62  ;;  %v68_v4 = vld [vmem:[#allocation5 + $0x70] sm:$0xff]  ;;  %v2338_v5 = vpack.c.bf16 %v67_v3, %v66_v2 }
 0x524   :  { %2271 = vmatmul.mubr.msk.f32.vlgmr.msra.gmra.mrb[18].mxu1 %vm279_vm9, %v1535_v6  ;;  %2327 = vmatprep.subr.bf16.mxu0 %v2326_v21  ;;  %v69_v6 = vld [vmem:[#allocation5 + $0x78] sm:$0xff] }
 0x525   :  { %2329 = vmatpush3.bf16.msra.mxu0 %v2326_v21  ;;  %2333 = vmatpush3.bf16.msra.mxu1 %v2330_v62 }
 0x526   :  { %2335 = vmatprep.subr.bf16.mxu1 %v2334_v1  ;;  %2339 = vmatprep.subr.bf16.mxu0 %v2338_v5 }
 0x529   :  { %2337 = vmatpush3.bf16.msra.mxu1 %v2334_v1 }
 0x5ae   :  { %v437_v7 = vpop.f32.mrb[4].mxu1 }
 0x5af   :  { %v2202_v8 = vpop.f32.mrb[5].mxu1 }
 0x5b0   :  { %v70_v8 = vld [vmem:[#allocation5 + $0x80] sm:$0xff] }
 0x5b2   :  { %v602_v9 = vpop.f32.mrb[6].mxu1 }
 0x5b3   :  { %937 = vrot.lane.b32.xlu0 %v602_v9, %s2514_s23  ;;  %v2212_v10 = vpop.f32.mrb[7].mxu1  ;;  %v71_v9 = vld [vmem:[#allocation5 + $0x88] sm:$0xff] }
 0x5b4   :  { %v2346_v10 = vpack.c.bf16 %v71_v9, %v70_v8 }
 0x5e3   :  { %v767_v13 = vpop.f32.mrb[8].mxu1 }
 0x5e4   :  { %941 = vrot.lane.b32.xlu1 %v767_v13, %s2532_s7  ;;  %v2222_v16 = vpop.f32.mrb[9].mxu1 }
 0x5e7   :  { %v932_v20 = vpop.f32.mrb[10].mxu1 }
 0x5e8   :  { %945 = vrot.lane.b32.xlu1 %v932_v20, %s2533_s8  ;;  %v2232_v22 = vpop.f32.mrb[11].mxu1  ;;  %v2114_v20 = vld [vmem:[#allocation7 + $0x4] ss:$0 sm:$0xff] }
 0x5e9   :  { %v2115_v22 = vld [vmem:[#allocation7 + $0x5] ss:$0 sm:$0xff] }
 0x5eb   :  { %v1113_v23 = vpop.f32.mrb[12].mxu1 }
 0x5ec   :  { %v2242_v24 = vpop.f32.mrb[13].mxu1 }
 0x5ef   :  { %v1278_v25 = vpop.f32.mrb[14].mxu1 }
 0x5f0   :  { %1613 = vrot.lane.b32.xlu0 %v1278_v25, %s2514_s23  ;;  %v2252_v26 = vpop.f32.mrb[15].mxu1  ;;  %s2535_s23 = smov [#allocation8]  }
 0x5f1   :  { %s2069_s10 = sshll.u32 %s2535_s23, 4  ;;  %s2070_s10 = int_to_ptr.vmem [resolvable:$true] %s2069_s10 }
 0x5f2   :  { %s2484_s11 = scalar_lea.vmem %s2070_s10, 256  ;;  %p2489_p11 = scmp.lt.s32.totalorder %s2070_s10, %s2070_s10 }
 0x5f3   :  { %v1443_v27 = vpop.f32.mrb[16].mxu1  ;;  %p2485_p10 = scmp.ne.s32.totalorder %s2070_s10, %s2484_s11  ;;  %p2490_p12 = scmp.lt.s32.totalorder %s2484_s11, %s2484_s11 }
 0x5f4   :  { %1617 = vrot.lane.b32.xlu0 %v1443_v27, %s2532_s7  ;;  %v2262_v28 = vpop.f32.mrb[17].mxu1 }
 0x5f5   :  { %p2491_p13 = por %p2490_p12, %p2489_p11 }
 0x5f7   :  { %v1608_v18 = vpop.f32.mrb[18].mxu1  ;;  %p2492_p0 = pnand %p2491_p13, %p2485_p10 }
 0x5f8   :  { %1621 = vrot.lane.b32.xlu1 %v1608_v18, %s2533_s8  ;;  %v2272_v29 = vpop.f32.mrb[19].mxu1  ;;  %v72_v18 = vld [vmem:[#allocation5 + $0x90] sm:$0xff] }
 0x5f9   :  { %v73_v29 = vld [vmem:[#allocation5 + $0x98] sm:$0xff] }
 0x625   :  { %v938_v30 = vpop.permute.xlu0 %937 }
 0x626   :  { %v948_v32 = vsel %vm279_vm9, %v437_v7, %v938_v30  ;;  %v2342_v7 = vpack.c.bf16 %v69_v6, %v68_v4  ;;  %v2350_v30 = vpack.c.bf16 %v73_v29, %v72_v18 }
 0x656   :  { %v942_v31 = vpop.permute.xlu1 %941 }
 0x657   :  { %v950_v33 = vsel %vm949_vm10, %v948_v32, %v942_v31  ;;  %v2116_v31 = vld [vmem:[#allocation7 + $0x6] ss:$0 sm:$0xff] }
 0x65a   :  { %v946_v34 = vpop.permute.xlu1 %945 }
 0x65b   :  { %v952_v35 = vsel %vm951_vm11, %v950_v33, %v946_v34 }
 0x65c   :  { %2281 = vmatprep.mubr.msk.f32.mxu0 %vm151_vm7, %v952_v35 }
 0x662   :  { %v1614_v36 = vpop.permute.xlu0 %1613 }
 0x663   :  { %v1624_v39 = vsel %vm279_vm9, %v1113_v23, %v1614_v36 }
 0x666   :  { %v1618_v38 = vpop.permute.xlu0 %1617 }
 0x667   :  { %v1625_v40 = vsel %vm949_vm10, %v1624_v39, %v1618_v38  ;;  %v2534_v39 = vmov 1966171168  }
 0x66a   :  { %v1622_v41 = vpop.permute.xlu1 %1621 }
 0x66b   :  { %v1626_v42 = vsel %vm951_vm11, %v1625_v40, %v1622_v41  ;;  %v1934_v40 = vunpack.c.l.s4 %v2534_v39  ;;  %v1936_v41 = vlaneseq }
 0x66c   :  { %2282 = vmatmul.mubr.msk.f32.vlgmr.msra.gmra.mrb[14].mxu0 %vm151_vm7, %v1626_v42 }
 0x66d   :  { %2341 = vmatpush3.bf16.msra.mxu0 %v2338_v5  ;;  %v1935_v42 = vunpack.c.0.s8 %v1934_v40 }
 0x66e   :  { %2343 = vmatprep.subr.bf16.mxu0 %v2342_v7 }
 0x671   :  { %2345 = vmatpush3.bf16.msra.mxu0 %v2342_v7 }
 0x672   :  { %2347 = vmatprep.subr.bf16.mxu0 %v2346_v10 }
 0x675   :  { %2349 = vmatpush3.bf16.msra.mxu0 %v2346_v10 }
 0x676   :  { %2351 = vmatprep.subr.bf16.mxu0 %v2350_v30 }
 0x679   :  { %2353 = vmatpush3.bf16.msra.mxu0 %v2350_v30 }
 0x73f   :  { %v2283_v45 = vpop.f32.mrb[14].mxu0 }
 0x740   :  { %v1709_v46 = vadd.f32 %v2283_v45, %v2614_v44  ;;  %v1699_v47 = vpop.f32.mrb[15].mxu0  ;;  %v2121_v45 = vld [vmem:[#allocation7 + $0x7] ss:$0 sm:$0xff] }
 0x741   :  { %v1708_v48 = vadd.f32 %v1699_v47, %v2605_v37 }
 0x742   :  { %v2772_v49 = vadd.f32 %v2113_v43, %v1709_v46 }
 0x743   :  { %v2774_v50 = vadd.f32 %v2113_v43, %v1708_v48  ;;  %v1937_v43 = vshrl.u32 %v1936_v41, 7 }
 0x744   :  { %v1719_v19 = vsel %vm151_vm7, %v2772_v49, 0.0 }
 0x745   :  { %1720 = vadd.xlane.f32.xlu1 %v1719_v19  ;;  %v1716_v51 = vsel %vm151_vm7, %v2774_v50, 0.0  ;;  %v1938_v48 = vsub.s32 %v1935_v42, %v1937_v43 }
 0x746   :  { %1717 = vadd.xlane.f32.xlu0 %v1716_v51 }
 0x7d2   :  { %v1721_v52 = vpop.xlane.xlu1 %1720 }
 0x7d3   :  { %v1723_v53 = vmul.f32 0.03125, %v1721_v52  ;;  %v1718_v54 = vpop.xlane.xlu0 %1717 }
 0x7d4   :  { %v1722_v55 = vmul.f32 0.03125, %v1718_v54 }
 0x7d5   :  { %v1725_v44 = vsub.f32 %v2772_v49, %v1723_v53 }
 0x7d6   :  { %v1724_v37 = vsub.f32 %v2774_v50, %v1722_v55 }
 0x7d7   :  { %v1727_v58 = vmul.f32 %v1725_v44, %v1725_v44 }
 0x7d8   :  { %v1726_v56 = vmul.f32 %v1724_v37, %v1724_v37 }
 0x7d9   :  { %v1731_v59 = vsel %vm151_vm7, %v1727_v58, 0.0 }
 0x7da   :  { %v1728_v57 = vsel %vm151_vm7, %v1726_v56, 0.0 }
 0x7db   :  { %1729 = vadd.xlane.f32.xlu0 %v1728_v57 }
 0x7df   :  { %1732 = vadd.xlane.f32.xlu0 %v1731_v59 }
 0x868   :  { %v1730_v11 = vpop.xlane.xlu0 %1729 }
 0x869   :  { %v1734_v12 = vmul.f32 0.03125, %v1730_v11 }
 0x86b   :  { %v1736_v13 = vadd.f32 1e-05, %v1734_v12 }
 0x86c   :  { %v1733_v15 = vpop.xlane.xlu0 %1732 }
 0x86d   :  { %2414 = vrsqrt.f32 %v1736_v13  ;;  %v1735_v16 = vmul.f32 0.03125, %v1733_v15 }
 0x86f   :  { %v1737_v14 = vadd.f32 1e-05, %v1735_v16 }
 0x871   :  { %2416 = vrsqrt.f32 %v1737_v14 }
 0x877   :  { %v2415_v17 = vpop.eup %2414 }
 0x878   :  { %v1740_v21 = vmul.f32 %v2415_v17, %v1724_v37 }
 0x87a   :  { %v1746_v23 = vmul.f32 %v2114_v20, %v1740_v21 }
 0x87b   :  { %v2417_v24 = vpop.eup %2416 }
 0x87c   :  { %v1741_v25 = vmul.f32 %v2417_v24, %v1725_v44  ;;  %v1752_v26 = vadd.f32 %v2115_v22, %v1746_v23 }
 0x87e   :  { %v1747_v27 = vmul.f32 %v2114_v20, %v1741_v25  ;;  %2292 = vmatprep.mubr.msk.f32.mxu1 %vm151_vm7, %v1752_v26 }
 0x880   :  { %v1753_v28 = vadd.f32 %v2115_v22, %v1747_v27 }
 0x882   :  { %2293 = vmatmul.mubr.msk.f32.vlgmr.msra.gmra.mrb[20].mxu1 %vm151_vm7, %v1753_v28 }
 0x955   :  { %v2294_v32 = vpop.f32.mrb[20].mxu1 }
 0x956   :  { %v1836_v33 = vadd.f32 %v2294_v32, %v2116_v31  ;;  %v1830_v34 = vpop.f32.mrb[21].mxu1 }
 0x957   :  { %v1831_v35 = vadd.f32 %v2116_v31, %v1830_v34 }
 0x958   :  { %v1840_v38 = vmax.f32 %v1836_v33, 0.0 }
 0x959   :  { %v1839_v36 = vmax.f32 %v1831_v35, 0.0 }
 0x95b   :  { %2311 = vmatprep.mubr.msk.f32.mxu0 %vm1841_vm12, %v1839_v36 }
 0x95c   :  { %2312 = vmatmul.mubr.msk.f32.vlgmr.msra.gmra.mrb[16].mxu0 %vm1841_vm12, %v1840_v38 }
 0xa2f   :  { %v2313_v46 = vpop.f32.mrb[16].mxu0 }
 0xa30   :  { %v1924_v47 = vadd.f32 %v2313_v46, %v2772_v49  ;;  %v1914_v19 = vpop.f32.mrb[17].mxu0 }
 0xa31   :  { %v1923_v51 = vadd.f32 %v1914_v19, %v2774_v50 }
 0xa32   :  { %v1930_v52 = vadd.f32 %v2121_v45, %v1924_v47 }
 0xa33   :  { %v1929_v53 = vadd.f32 %v2121_v45, %v1923_v51 }
 0xa34   :  { %v1999_v54 = vcombine.high %v1930_v52, %v1930_v52  ;;  %v2006_v55 = vrot.slane %v1930_v52, %v1938_v48 }
 0xa35   :  { %v1932_v44 = vcombine.high %v1929_v53, %v1929_v53  ;;  %v1939_v37 = vrot.slane %v1929_v53, %v1938_v48 }
 0xa36   :  { %v2013_v56 = vrot.slane %v1999_v54, %v1938_v48  ;;  %v2014_v57 = vcombine.high %v2006_v55, %v2006_v55  ;;  %v2022_v58 = vrot.slane %v2006_v55, %v1938_v48 }
 0xa37   :  { %v1946_v59 = vrot.slane %v1932_v44, %v1938_v48  ;;  %v1947_v60 = vcombine.high %v1939_v37, %v1939_v37  ;;  %v1955_v61 = vrot.slane %v1939_v37, %v1938_v48 }
 0xa38   :  { %v2015_v62 = vcombine.high %v2013_v56, %v2013_v56  ;;  %v2029_v63 = vrot.slane %v2013_v56, %v1938_v48  ;;  %v2036_v49 = vrot.slane %v2014_v57, %v1938_v48  ;;  %v2044_v0 = vcombine.high %v2022_v58, %v2022_v58  ;;  %2056 = vst.msk [vmem:[#allocation8 + $0x1] sm:$0x1] %vm1989_vm13, %v2022_v58 }
 0xa39   :  { %v1948_v50 = vcombine.high %v1946_v59, %v1946_v59  ;;  %v1962_v1 = vrot.slane %v1946_v59, %v1938_v48  ;;  %v1969_v2 = vrot.slane %v1947_v60, %v1938_v48  ;;  %v1977_v3 = vcombine.high %v1955_v61, %v1955_v61  ;;  %1990 = vst.msk [vmem:[#allocation8] sm:$0x1] %vm1989_vm13, %v1955_v61 }
 0xa3a   :  { %v2043_v4 = vrot.slane %v2015_v62, %v1938_v48  ;;  %v2045_v5 = vcombine.high %v2029_v63, %v2029_v63  ;;  %v2046_v6 = vcombine.high %v2036_v49, %v2036_v49  ;;  %2057 = vst.msk [vmem:[#allocation8 + $0x3] sm:$0x1] %vm1989_vm13, %v2036_v49  ;;  %2058 = vst.msk [vmem:[#allocation8 + $0x5] sm:$0x1] %vm1989_vm13, %v2044_v0 }
 0xa3b   :  { %2060 = vst.msk [vmem:[#allocation8 + $0x9] sm:$0x1] %vm1989_vm13, %v2029_v63  ;;  %v1976_v7 = vrot.slane %v1948_v50, %v1938_v48  ;;  %v1978_v8 = vcombine.high %v1962_v1, %v1962_v1  ;;  %v1979_v9 = vcombine.high %v1969_v2, %v1969_v2  ;;  %1991 = vst.msk [vmem:[#allocation8 + $0x2] sm:$0x1] %vm1989_vm13, %v1969_v2 }
 0xa3c   :  { %1992 = vst.msk [vmem:[#allocation8 + $0x4] sm:$0x1] %vm1989_vm13, %v1977_v3  ;;  %1994 = vst.msk [vmem:[#allocation8 + $0x8] sm:$0x1] %vm1989_vm13, %v1962_v1  ;;  %v2047_v10 = vcombine.high %v2043_v4, %v2043_v4 }
 0xa3d   :  { %2059 = vst.msk [vmem:[#allocation8 + $0x7] sm:$0x1] %vm1989_vm13, %v2046_v6  ;;  %2061 = vst.msk [vmem:[#allocation8 + $0xb] sm:$0x1] %vm1989_vm13, %v2043_v4  ;;  %v1980_v11 = vcombine.high %v1976_v7, %v1976_v7 }
 0xa3e   :  { %2062 = vst.msk [vmem:[#allocation8 + $0xd] sm:$0x1] %vm1989_vm13, %v2045_v5  ;;  %1993 = vst.msk [vmem:[#allocation8 + $0x6] sm:$0x1] %vm1989_vm13, %v1979_v9 }
 0xa3f   :  { %1995 = vst.msk [vmem:[#allocation8 + $0xa] sm:$0x1] %vm1989_vm13, %v1976_v7  ;;  %1996 = vst.msk [vmem:[#allocation8 + $0xc] sm:$0x1] %vm1989_vm13, %v1978_v8 }
 0xa40   :  { %2063 = vst.msk [vmem:[#allocation8 + $0xf] sm:$0x1] %vm1989_vm13, %v2047_v10  ;;  %1997 = vst.msk [vmem:[#allocation8 + $0xe] sm:$0x1] %vm1989_vm13, %v1980_v11 }
 0xa41   :  { %2495 = shalt.err (!%p2492_p0)
}
 0xa42   :  { %s2496_s14 = scalar_lea.hbm %s2822_s3, 256 }
 0xa43   :  { %p2497_p1 = scmp.ne.s32.totalorder %s2822_s3, %s2496_s14  ;;  %p2500_p2 = scmp.lt.u32.totalorder %s2496_s14, %s2822_s3 }
 0xa45   :  { %p2502_p3 = pnand %p2500_p2, %p2497_p1 }
 0xa47   :  { %2505 = shalt.err (!%p2502_p3)
}
 0xa48   :  { %2075 = dma.vmem_to_hbm [thread:$0]  %s2070_s10, 256, %s2822_s3, [#allocation4], %s2516_s1, %s2516_s1, %s2517_s9  }
 0xa49   :  { %2510 = dma.done.wait [#allocation4], 256  }
 0xa4a   :  { %2511 = vsyncadd [#allocation4], 4294967040 }
 0xa4b   :  { %2079 = vsyncpa [#allocation3], 1 }
 0xa4c   :  { %2080 = vsyncpa [#allocation6], 1 }
 0xa4d   :  { %2081 = vsyncpa [#allocation4], 1 }

</bundles_post_ra>
